<compile_context>
chip_gen: v7x
topology: tpu7x:2x2x1
jax: 0.10.0
libtpu: 0.0.40
codegen_flags: <defaults>
</compile_context>

<pallas_src>
import jax
import jax.numpy as jnp
from jax.experimental import pallas as pl
from jax.experimental.pallas import tpu as pltpu


# ---------------------------------------------------------------------------
# Pallas kernel: fused decoder-conv + Conv_out + LeakyReLU + softmax(bins)
# + expectation over bin centers, HW on the lane axis.
#
#   feat_ref : [1, C2, T]    feature tile (bf16, channels on sublanes)
#   wdec_ref : [Dd, C2]      decoder 1x1 conv weight, transposed (bf16)
#   wout_ref : [BINS, Dd]    Conv_out 1x1 conv weight, transposed (f32)
#   c_ref    : [1, BINS, 1]  bin centers for this batch element (f32)
#   pred_ref : [1, 1, T]     depth prediction tile (lane-dense row)
# ---------------------------------------------------------------------------
def _depth_head_kernel(feat_ref, wdec_ref, wout_ref, c_ref, pred_ref):
    x_t = feat_ref[0]                                            # [C2, T] bf16

    # Decoder 1x1 conv + ReLU (bf16 MXU inputs, f32 accumulation).
    hidden = jnp.dot(wdec_ref[...], x_t,
                     preferred_element_type=jnp.float32)         # [Dd, T]
    hidden = jnp.maximum(hidden, 0.0)

    # Conv_out (1x1, no bias) + LeakyReLU (slope 0.01, torch default).
    logits = jnp.dot(wout_ref[...], hidden,
                     preferred_element_type=jnp.float32)         # [BINS, T]
    a = jnp.where(logits > 0, logits, 0.01 * logits)

    # Softmax over the bin axis (sublane reduction) fused with the
    # expectation over bin centers:
    #   pred = sum_b softmax(a)_b * c_b = (sum_b e_b * c_b) / (sum_b e_b)
    m = jnp.max(a, axis=0, keepdims=True)                        # [1, T]
    e = jnp.exp(a - m)                                           # [BINS, T]
    den = jnp.sum(e, axis=0, keepdims=True)                      # [1, T]
    c = c_ref[0]                                                 # [BINS, 1]
    num = jnp.sum(e * c, axis=0, keepdims=True)                  # [1, T]
    pred = num * pl.reciprocal(den, approx=True)                 # EUP slot

    pred_ref[0] = pred.astype(pred_ref.dtype)                    # lane-dense


def _pick_hw_tile(hw, target=2048):
    """Lane-tile width: whole extent if small, else a multiple of 128 <= target."""
    if hw <= target:
        return hw
    for t in range(target, 0, -128):
        if hw % t == 0:
            return t
    return target  # ragged last block; Pallas masks the partial write


def depth_head(feat_t, w_dec, w_out, centers, *, hw_tile=2048):
    """Fused depth head.

    feat_t : [B, C2, S]   features, channels-first (S = spatial on lanes)
    w_dec  : [C2, Dd]     decoder 1x1 conv weight
    w_out  : [Dd, BINS]   Conv_out 1x1 conv weight (no bias)
    centers: [B, BINS]
    returns: [B, 1, S]
    """
    B, C2, S = feat_t.shape
    Dd = w_dec.shape[1]
    BINS = w_out.shape[1]
    T = _pick_hw_tile(S, hw_tile)

    # bf16 on the HBM-dominant feature stream + decoder weight (MXU inputs);
    # tiny Conv_out weight and centers stay f32.
    feat_bf = feat_t.astype(jnp.bfloat16)
    w_dec_t = jnp.transpose(w_dec).astype(jnp.bfloat16)          # [Dd, C2]
    w_out_t = jnp.transpose(w_out).astype(jnp.float32)           # [BINS, Dd]
    centers3 = centers.reshape(B, BINS, 1).astype(jnp.float32)

    # Explicit VMEM budget: double-buffered feat/out tiles + weights +
    # in-kernel f32 intermediates, with generous headroom.  Stays well under
    # v7x's 64 MiB physical VMEM for T <= 2048.
    vmem_est = (2 * (C2 * T * 2)                     # feat double-buffer
                + 2 * (T * 4)                        # out double-buffer
                + Dd * C2 * 2 + BINS * Dd * 4 + BINS * 4
                + (Dd + 4 * BINS + 8) * T * 4)       # hidden/logits/exp/...
    vmem_limit = int(max(2 * vmem_est + (4 << 20), 16 << 20))

    # NOTE: if a trace shows exposed DMA at this tile size, deepen the feat
    # pipeline with pipeline_mode=pl.Buffered(3) on the feat BlockSpec.
    return pl.pallas_call(
        _depth_head_kernel,
        out_shape=jax.ShapeDtypeStruct((B, 1, S), jnp.float32),
        grid_spec=pltpu.PrefetchScalarGridSpec(
            num_scalar_prefetch=0,
            grid=(B, pl.cdiv(S, T)),
            in_specs=[
                pl.BlockSpec((1, C2, T), lambda b, t: (b, 0, t)),
                pl.BlockSpec((Dd, C2), lambda b, t: (0, 0)),
                pl.BlockSpec((BINS, Dd), lambda b, t: (0, 0)),
                pl.BlockSpec((1, BINS, 1), lambda b, t: (b, 0, 0)),
            ],
            out_specs=pl.BlockSpec((1, 1, T), lambda b, t: (b, 0, t)),
        ),
        compiler_params=pltpu.CompilerParams(
            dimension_semantics=("parallel", "parallel"),
            vmem_limit_bytes=vmem_limit),
    )(feat_bf, w_dec_t, w_out_t, centers3)


# ---------------------------------------------------------------------------
# Glue: encoder / binning stand-ins (plain XLA) + bin arithmetic
# ---------------------------------------------------------------------------
def _avg_pool2x2(x_nhwc):
    B, H, W, C = x_nhwc.shape
    return x_nhwc.reshape(B, H // 2, 2, W // 2, 2, C).mean(axis=(2, 4))


def get_features(x_nhwc, params):
    # TODO(synk): real backbone ('features' submodule) is an external model;
    # replaced by 3 stages of (1x1 conv + ReLU + 2x2 avg-pool) in plain XLA --
    # K/N of 3..32 cannot feed the MXU, so Pallas would only add launches.
    feats = []
    f0 = jax.nn.relu(jnp.einsum("bhwc,cd->bhwd", x_nhwc, params["enc0"]))
    feats.append(f0)                                          # [B,16,16, 8]
    f1 = jax.nn.relu(
        jnp.einsum("bhwc,cd->bhwd", _avg_pool2x2(f0), params["enc1"]))
    feats.append(f1)                                          # [B, 8, 8,16]
    f2 = jax.nn.relu(
        jnp.einsum("bhwc,cd->bhwd", _avg_pool2x2(f1), params["enc2"]))
    feats.append(f2)                                          # [B, 4, 4,32]
    return f2, feats


def binning(f2, lidar_nhwc, params):
    # TODO(synk): Cross_Attention_Block is an external module; stand-in =
    # minimal single-query cross-attention (lidar -> query, f[2] -> K/V).
    B, Hf, Wf, C = f2.shape
    seq = f2.reshape(B, Hf * Wf, C)                        # [B, 16, 32]
    lid = lidar_nhwc.reshape(B, -1)                        # [B, 256]
    q = lid @ params["w_l"]                                # [B, dk]
    k = jnp.einsum("bsc,cd->bsd", seq, params["w_k"])      # [B, S, dk]
    v = jnp.einsum("bsc,cd->bsd", seq, params["w_v"])      # [B, S, dk]
    attn = jax.nn.softmax(
        jnp.einsum("bd,bsd->bs", q, k) / jnp.sqrt(jnp.float32(k.shape[-1])),
        axis=-1)
    ctx = jnp.einsum("bs,bsd->bd", attn, v)                # [B, dk]
    return jax.nn.relu(ctx @ params["w_b"])                # [B, bin_size]


def depthnet_forward(data, params):
    # data['image']: [B,3,H,W] NCHW, data['lidar']: [B,1,H,W] NCHW
    x = jnp.transpose(data["image"], (0, 2, 3, 1))   # -> NHWC
    y = jnp.transpose(data["lidar"], (0, 2, 3, 1))   # -> NHWC
    B, H, W, _ = x.shape

    _, f = get_features(x, params)

    # Adaptive binning (stand-in) + bin-edge arithmetic (matches the torch
    # F.pad / cumsum / centers computation exactly).
    bins = binning(f[2], y, params) + 0.001          # [B, bin_size]
    bins = bins / jnp.sum(bins, axis=1, keepdims=True)
    bin_width = jnp.pad(bins, ((0, 0), (1, 0)), constant_values=0.001)
    bin_edge = jnp.cumsum(bin_width, axis=1)
    centers = 0.5 * (bin_edge[:, :-1] + bin_edge[:, 1:])   # [B, bin_size]

    # Fused Pallas head on the LOW-RES feature map (hoisted before the
    # nearest upsample -- exact for nearest replication); only the scalar
    # prediction is upsampled afterwards.
    f2 = f[2]
    _, Hf, Wf, C2 = f2.shape
    feat_t = jnp.transpose(f2, (0, 3, 1, 2)).reshape(B, C2, Hf * Wf)  # tiny
    pred_low = depth_head(feat_t, params["dec"], params["w_out"], centers)
    pred_low = pred_low.reshape(B, 1, Hf, Wf)
    predict = jnp.repeat(jnp.repeat(pred_low, H // Hf, axis=2),
                         W // Wf, axis=3)                  # [B,1,H,W]
    return predict, centers


# ---------------------------------------------------------------------------
# Parameter construction (deterministic) and test harness
# ---------------------------------------------------------------------------
def make_params(key, *, bin_size=16, decoder_dim=24, dk=32):
    ks = jax.random.split(key, 8)

    def w(k, shape):
        return (jax.random.normal(k, shape, jnp.float32) /
                jnp.sqrt(jnp.float32(shape[0])))

    return {
        "enc0": w(ks[0], (3, 8)),
        "enc1": w(ks[1], (8, 16)),
        "enc2": w(ks[2], (16, 32)),
        "dec":  w(ks[3], (32, decoder_dim)),
        "w_l":  w(ks[4], (256, dk)),
        "w_k":  w(ks[5], (32, dk)),
        "w_v":  w(ks[6], (32, dk)),
        "w_b":  w(ks[7], (dk, bin_size)),
        "w_out": w(jax.random.fold_in(key, 99), (decoder_dim, bin_size)),
    }


def _head_reference(feat_nhwc, w_dec, w_out, centers):
    """Pure-JAX reference for the fused head (mirrors the bf16 input cast)."""
    f16 = feat_nhwc.astype(jnp.bfloat16).astype(jnp.float32)
    w16 = w_dec.astype(jnp.bfloat16).astype(jnp.float32)
    hidden = jax.nn.relu(jnp.einsum("bhwc,cd->bhwd", f16, w16))
    logits = jnp.einsum("bhwd,dk->bhwk", hidden, w_out)
    a = jnp.where(logits > 0, logits, 0.01 * logits)
    p = jax.nn.softmax(a, axis=-1)
    pred = jnp.sum(p * centers[:, None, None, :], axis=-1)
    return pred[:, None, :, :]                              # [B,1,Hf,Wf]


if __name__ == "__main__":
    key = jax.random.PRNGKey(0)
    k_img, k_lid, k_par = jax.random.split(key, 3)

    B, H, W = 2, 16, 16
    image = jax.random.normal(k_img, (B, 3, H, W), jnp.float32)
    lidar = jax.random.uniform(k_lid, (B, 1, H, W), jnp.float32)
    params = make_params(k_par, bin_size=16, decoder_dim=24)

    data = {"image": image, "lidar": lidar}
    predict, centers = depthnet_forward(data, params)
    predict = jax.block_until_ready(predict)
    centers = jax.block_until_ready(centers)

    assert predict.shape == (B, 1, H, W)
    assert centers.shape == (B, 16)

    # Cross-check the fused Pallas head against a pure-JAX reference.
    # (Tolerance covers bf16 MXU inputs + the EUP approximate reciprocal.)
    x_nhwc = jnp.transpose(image, (0, 2, 3, 1))
    _, f = get_features(x_nhwc, params)
    Hf, Wf = f[2].shape[1], f[2].shape[2]
    pred_low_ref = _head_reference(f[2], params["dec"], params["w_out"],
                                   centers)
    pred_ref = jnp.repeat(jnp.repeat(pred_low_ref, H // Hf, axis=2),
                          W // Wf, axis=3)
    max_err = float(jnp.max(jnp.abs(predict - pred_ref)))
    assert jnp.allclose(predict, pred_ref, atol=5e-3, rtol=5e-3), max_err

    print("KERNEL_OK")
</pallas_src>

<mosaic_0001>
module attributes {stable_mosaic.version = 11 : i64} {
  func.func @_depth_head_kernel(%arg0: i32, %arg1: i32, %arg2: memref<1x32x16xbf16, #tpu.memory_space<vmem>>, %arg3: memref<24x32xbf16, #tpu.memory_space<vmem>>, %arg4: memref<16x24xf32, #tpu.memory_space<vmem>>, %arg5: memref<1x16x1xf32, #tpu.memory_space<vmem>>, %arg6: memref<1x1x16xf32, #tpu.memory_space<vmem>>) attributes {dimension_semantics = [#tpu.dimension_semantics<parallel>, #tpu.dimension_semantics<parallel>], iteration_bounds = array<i64: 2, 1>, scalar_prefetch = 0 : i64, scratch_operands = 0 : i64, tpu.core_type = #tpu.core_type<tc>, window_params = [{transform_indices = @transform_0, window_bounds = array<i64: 1, 32, 16>}, {pipeline_mode = #tpu.pipeline_mode<synchronous>, transform_indices = @transform_1, window_bounds = array<i64: 24, 32>}, {pipeline_mode = #tpu.pipeline_mode<synchronous>, transform_indices = @transform_2, window_bounds = array<i64: 16, 24>}, {transform_indices = @transform_3, window_bounds = array<i64: 1, 16, 1>}, {transform_indices = @transform_4, window_bounds = array<i64: 1, 1, 16>}]} {
    %c0 = arith.constant 0 : index
    %c0_0 = arith.constant 0 : index
    %c0_1 = arith.constant 0 : index
    %0 = vector.load %arg2[%c0, %c0_0, %c0_1] : memref<1x32x16xbf16, #tpu.memory_space<vmem>>, vector<1x32x16xbf16>
    %1 = vector.shape_cast %0 : vector<1x32x16xbf16> to vector<32x16xbf16>
    %c0_2 = arith.constant 0 : index
    %c0_3 = arith.constant 0 : index
    %2 = vector.load %arg3[%c0_2, %c0_3] : memref<24x32xbf16, #tpu.memory_space<vmem>>, vector<24x32xbf16>
    %cst = arith.constant dense<0.000000e+00> : vector<24x16xf32>
    %3 = tpu.matmul %2, %1, %cst {dimension_numbers = #tpu.dot_dimension_numbers<[1], [0], [0], [1], [0, 0, 1, 1], [], []>} : vector<24x32xbf16>, vector<32x16xbf16>, vector<24x16xf32> -> vector<24x16xf32>
    %cst_4 = arith.constant 0.000000e+00 : f32
    %4 = vector.broadcast %cst_4 : f32 to vector<24x16xf32>
    %5 = arith.maximumf %3, %4 : vector<24x16xf32>
    %c0_5 = arith.constant 0 : index
    %c0_6 = arith.constant 0 : index
    %6 = vector.load %arg4[%c0_5, %c0_6] : memref<16x24xf32, #tpu.memory_space<vmem>>, vector<16x24xf32>
    %cst_7 = arith.constant dense<0.000000e+00> : vector<16x16xf32>
    %7 = tpu.matmul %6, %5, %cst_7 {dimension_numbers = #tpu.dot_dimension_numbers<[1], [0], [0], [1], [0, 0, 1, 1], [], []>} : vector<16x24xf32>, vector<24x16xf32>, vector<16x16xf32> -> vector<16x16xf32>
    %cst_8 = arith.constant 0.000000e+00 : f32
    %8 = vector.broadcast %cst_8 : f32 to vector<16x16xf32>
    %9 = arith.cmpf ogt, %7, %8 : vector<16x16xf32>
    %cst_9 = arith.constant 0.00999999977 : f32
    %10 = vector.broadcast %cst_9 : f32 to vector<16x16xf32>
    %11 = arith.mulf %10, %7 : vector<16x16xf32>
    %12 = arith.select %9, %7, %11 : vector<16x16xi1>, vector<16x16xf32>
    %cst_10 = arith.constant dense<0xFF800000> : vector<16xf32>
    %13 = vector.multi_reduction <maximumf>, %12, %cst_10 [0] : vector<16x16xf32> to vector<16xf32>
    %14 = vector.shape_cast %13 : vector<16xf32> to vector<1x16xf32>
    %15 = vector.broadcast %14 : vector<1x16xf32> to vector<16x16xf32>
    %16 = arith.subf %12, %15 : vector<16x16xf32>
    %17 = math.exp %16 : vector<16x16xf32>
    %cst_11 = arith.constant dense<0.000000e+00> : vector<16xf32>
    %18 = vector.multi_reduction <add>, %17, %cst_11 [0] : vector<16x16xf32> to vector<16xf32>
    %19 = vector.shape_cast %18 : vector<16xf32> to vector<1x16xf32>
    %c0_12 = arith.constant 0 : index
    %c0_13 = arith.constant 0 : index
    %c0_14 = arith.constant 0 : index
    %20 = vector.load %arg5[%c0_12, %c0_13, %c0_14] : memref<1x16x1xf32, #tpu.memory_space<vmem>>, vector<1x16x1xf32>
    %21 = vector.shape_cast %20 : vector<1x16x1xf32> to vector<16x1xf32>
    %22 = vector.broadcast %21 : vector<16x1xf32> to vector<16x16xf32>
    %23 = arith.mulf %17, %22 : vector<16x16xf32>
    %cst_15 = arith.constant dense<0.000000e+00> : vector<16xf32>
    %24 = vector.multi_reduction <add>, %23, %cst_15 [0] : vector<16x16xf32> to vector<16xf32>
    %25 = vector.shape_cast %24 : vector<16xf32> to vector<1x16xf32>
    %26 = tpu.reciprocal %19 {approx = true} : vector<1x16xf32> -> vector<1x16xf32>
    %27 = arith.mulf %25, %26 : vector<1x16xf32>
    %c0_16 = arith.constant 0 : index
    %c0_17 = arith.constant 0 : index
    %c0_18 = arith.constant 0 : index
    %28 = vector.load %arg6[%c0_16, %c0_17, %c0_18] : memref<1x1x16xf32, #tpu.memory_space<vmem>>, vector<1x1x16xf32>
    %29 = vector.shape_cast %28 : vector<1x1x16xf32> to vector<1x16xf32>
    %30 = vector.shape_cast %27 : vector<1x16xf32> to vector<1x1x16xf32>
    tpu.vector_store %arg6[%c0_16, %c0_17, %c0_18], %30 {strides = array<i32>} : memref<1x1x16xf32, #tpu.memory_space<vmem>>, vector<1x1x16xf32>,
    return
  }
  func.func @transform_0(%arg0: i32, %arg1: i32) -> (i32, i32, i32) {
    %c0_i32 = arith.constant 0 : i32
    %c0_i32_0 = arith.constant 0 : i32
    return %arg0, %c0_i32, %arg1 : i32, i32, i32
  }
  func.func @transform_1(%arg0: i32, %arg1: i32) -> (i32, i32) {
    %c0_i32 = arith.constant 0 : i32
    %c0_i32_0 = arith.constant 0 : i32
    %c0_i32_1 = arith.constant 0 : i32
    return %c0_i32, %c0_i32_0 : i32, i32
  }
  func.func @transform_2(%arg0: i32, %arg1: i32) -> (i32, i32) {
    %c0_i32 = arith.constant 0 : i32
    %c0_i32_0 = arith.constant 0 : i32
    %c0_i32_1 = arith.constant 0 : i32
    return %c0_i32, %c0_i32_0 : i32, i32
  }
  func.func @transform_3(%arg0: i32, %arg1: i32) -> (i32, i32, i32) {
    %c0_i32 = arith.constant 0 : i32
    %c0_i32_0 = arith.constant 0 : i32
    %c0_i32_1 = arith.constant 0 : i32
    return %arg0, %c0_i32, %c0_i32_0 : i32, i32, i32
  }
  func.func @transform_4(%arg0: i32, %arg1: i32) -> (i32, i32, i32) {
    %c0_i32 = arith.constant 0 : i32
    %c0_i32_0 = arith.constant 0 : i32
    return %arg0, %c0_i32, %arg1 : i32, i32, i32
  }
}

</mosaic_0001>

<bundles_post_ra>
// kernel: tpu_custom_call.1
= control target key start
LH: loop header
LB: loop body
LE: loop exit
PB: predicated region body
PF: predicated region fallthrough
CT: control target
= control target key end

     0   :  { %9 = vsyncpa [#allocation3], 0  ;;  %s925_s0 = inlined_call_operand.vmem [shape: bf16[2,32,16], index: 0, kind: input, shape index: {}]   ;;  %s926_s1 = inlined_call_operand.vmem [shape: bf16[24,32], index: 1, kind: input, shape index: {}]   ;;  %s927_s2 = inlined_call_operand.vmem [shape: f32[16,24], index: 2, kind: input, shape index: {}]   ;;  %s928_s3 = inlined_call_operand.vmem [shape: f32[2,16,1], index: 3, kind: input, shape index: {}]   ;;  %s929_s4 = inlined_call_operand.hbm [shape: f32[2,1,16], index: 4, kind: output, shape index: {}]  }
   0x1   :  { %11 = vsyncpa [#allocation3 + $0x1], 0  ;;  %s790_s15 = smov 0   ;;  %s792_s16 = smov 0  }
   0x2   :  { %s794_s17 = smov 0   ;;  %s796_s18 = smov 0  }
   0x3   :  { %s798_s19 = smov 0   ;;  %s800_s20 = smov 0  }
   0x4 LB: > { %s564_s21 = sadd.s32 4294967295, %s761_s20   ;;  %s565_s22 = sadd.s32 4294967294, %s761_s20   ;;  %s761_s20 = sphi %s800_s20, %s17_s20   ;;  %s757_s19 = sphi %s798_s19, %s936_s19   ;;  %s753_s18 = sphi %s796_s18, %s935_s18   ;;  %s749_s17 = sphi %s794_s17, %s934_s17   ;;  %s745_s16 = sphi %s792_s16, %s933_s16   ;;  %s741_s15 = sphi %s790_s15, %s932_s15  }
   0x5   : > { %s29_s23 = sadd.s32 1, %s757_s19  ;;  %s134_s24 = sadd.s32 1, %s749_s17 }
   0x6   : > { %p31_p0 = scmp.ge.s32.totalorder %s29_s23, 2  ;;  %p144_p1 = scmp.ne.s32.totalorder %s749_s17, %s745_s16 }
   0x7   : > { %p145_p2 = scmp.eq.s32.totalorder %s564_s21, 1  ;;  %p150_p3 = scmp.ne.s32.totalorder %s745_s16, %s741_s15 }
   0x8   : > { %s938_s23 = smov (%p31_p0, %s29_s23), 0  ;;  %p151_p5 = scmp.eq.s32.totalorder %s565_s22, 1 }
   0x9   : > { %p830_p4 = por %p145_p2, %p144_p1  ;;  %s129_s26 = ssub.s32 %s757_s19, %s938_s23 }
   0xa   : > { %p568_p6 = scmp.ge.s32.totalorder %s761_s20, 1  ;;  %p132_p7 = scmp.eq.s32.totalorder %s129_s26, 0 }
   0xb   : > { %p837_p8 = por %p151_p5, %p150_p3  ;;  %p194_p9 = scmp.lt.s32.totalorder %s761_s20, 3 }
   0xc   : > { %s843_s28 = scalar_select %p132_p7, %s749_s17, %s134_s24  }
   0xd   : > { %p195_p10 = pnand %p568_p6, %p194_p9 }
   0xe   : > { %p227_p11 = scmp.lt.s32.totalorder (!%p195_p10), %s753_s18, 1  ;;  %v675_v0 = vld [vmem:[%s926_s1] sm:$0xff] (!%p195_p10)   ;;  %vm268_vm0 = vcmask (!%p195_p10), 261120   ;;  %v676_v3 = vld [vmem:[%s926_s1 + $0x8] ss:$0 sps:$4 sm:$0xff] (!%p195_p10)   ;;  %vm328_vm1 = vcmask (!%p195_p10), 195584  }
   0xf   : > { %198 = sbr.rel (%p195_p10) target bundleno = 549 (0x225), region = 36  ;;  %599 = vmatprep.mubr.msk.bf16.mxu0 (!%p195_p10), %vm268_vm0, %v675_v0  ;;  %v326_v4 = vld [vmem:[%s927_s2] sm:$0xff] (!%p195_p10)  ;;  %v763_v5 = vmov (!%p195_p10), 0   ;;  %v327_v16 = vld [vmem:[%s927_s2 + $0x8] sm:$0xff] (!%p195_p10)  ;;  %vm416_vm3 = vcmask (!%p195_p10), 130048   ;;  %s225_s29 = sand.u32 (!%p195_p10), 1, %s745_s16  }
  0x10   : > { %609 = vmatprep.mubr.msk.f32.mxu1 (!%p195_p10), %vm328_vm1, %v326_v4  ;;  %672 = vset.pattern.permute.xlu0 (!%p195_p10), %v763_v5  ;;  %s581_s30 = sshll.u32 (!%p195_p10), %s753_s18, 4  ;;  %vm466_vm5 = vcmask (!%p195_p10), 122880   ;;  %s469_s10 = scalar_lea.sflag (!%p195_p10), [#allocation3], %s225_s29 }
  0x16   : > { %s228_s5 = scalar_select %p227_p11, %s753_s18, 1 }
  0x17   : > { %s764_s18 = smov [#allocation2]  }
  0x18   : > { %s584_s6 = sshll.u32 %s228_s5, 4  ;;  %s226_s5 = scalar_lea.vmem [#allocation2], %s225_s29 }
  0x19   : > { %s234_s9 = scalar_lea.vmem %s925_s0, %s584_s6  ;;  %s239_s22 = scalar_lea.vmem %s928_s3, %s584_s6 }
  0x1a   : > { %v673_v1 = vld [vmem:[%s234_s9] sm:$0xff]   ;;  %v674_v2 = vld [vmem:[%s234_s9 + $0x8] sm:$0xff]   ;;  %s482_s6 = sshll.u32 %s226_s5, 4  ;;  %s878_s9 = scalar_lea.hbm %s929_s4, %s581_s30  ;;  %s880_s6 = int_to_ptr.vmem [resolvable:$true] %s482_s6 }
  0x1b   : > { %595 = vmatprep.subr.bf16.mxu0 %v673_v1  ;;  %v441_v6 = vld [vmem:[%s239_s22] sm:$0xff]  ;;  %v442_v7 = vld [vmem:[%s239_s22 + $0x8] sm:$0xff]  ;;  %s683_s11 = scalar_lea.vmem %s880_s6, 16  ;;  %s687_s12 = sshll.u32 %s764_s18, 4  ;;  %s688_s12 = int_to_ptr.vmem [resolvable:$false] %s687_s12 }
  0x1c   : > { %596 = vmatpush3.bf16.msra.mxu0 %v673_v1  ;;  %445 = vperm.xlu0 %672, %v441_v6   ;;  %p684_p12 = scmp.ne.s32.totalorder %s880_s6, %s683_s11  ;;  %s689_s13 = scalar_lea.vmem %s688_s12, 32 }
  0x1d   : > { %597 = vmatprep.subr.bf16.mxu0 %v674_v2  ;;  %p690_p1 = scmp.lt.s32.totalorder %s880_s6, %s688_s12  ;;  %p691_p2 = scmp.lt.s32.totalorder %s689_s13, %s683_s11 }
  0x1e   : > { %p685_p13 = pnand %p684_p12, %p830_p4 }
  0x1f   : > { %p692_p3 = por %p691_p2, %p690_p1 }
  0x20   : > { %598 = vmatpush3.bf16.msra.mxu0 %v674_v2  ;;  %450 = vperm.xlu0 %672, %v442_v7   ;;  %p686_p0 = pneg %p685_p13 }
  0x22   : > { %p693_p5 = pnand %p692_p3, %p686_p0 }
  0x23   : > { %600 = vmatmul.mubr.msk.bf16.vlgmr.msra.gmra.mrb[0].mxu0 %vm268_vm0, %v676_v3 }
  0x9b   : > { %v446_v36 = vpop.permute.xlu0 %445 }
  0x9f   : > { %v451_v37 = vpop.permute.xlu0 %450 }
  0xf6   : > { %v601_v8 = vpop.f32.mrb[0].mxu0 }
  0xf7   : > { %v309_v9 = vpop.f32.mrb[1].mxu0  ;;  %v325_v15 = vmax.f32 %v601_v8, 0.0 }
  0xf8   : > { %v602_v10 = vpop.f32.mrb[2].mxu0  ;;  %v323_v12 = vmax.f32 %v309_v9, 0.0 }
  0xf9   : > { %v312_v11 = vpop.f32.mrb[3].mxu0 }
  0xfa   : > { %v324_v13 = vmax.f32 %v312_v11, 0.0 }
  0xfc   : > { %v612_v14 = vpack.c.bf16 %v324_v13, %v323_v12 }
  0xfe   : > { %613 = vmatprep.subr.bf16.mxu1 %v612_v14 }
  0xff   : > { %615 = vmatpush3.bf16.msra.mxu1 %v612_v14 }
 0x100   : > { %607 = vmatprep.subr.mxu1 %v325_v15 }
 0x103   : > { %608 = vmatpush3.msra.mxu1 %v325_v15 }
 0x104   : > { %610 = vmatmul.mubr.msk.f32.vlgmr.msra.gmra.mrb[0].mxu1 %vm328_vm1, %v327_v16 }
 0x1d7   : > { %v611_v17 = vpop.f32.mrb[0].mxu1 }
 0x1d8   : > { %vm411_vm2 = vcmp.gt.f32.partialorder %v611_v17, 0.0  ;;  %v413_v18 = vmul.f32 0.01, %v611_v17  ;;  %v401_v19 = vpop.f32.mrb[1].mxu1 }
 0x1d9   : > { %vm410_vm4 = vcmp.gt.f32.partialorder %v401_v19, 0.0  ;;  %v412_v20 = vmul.f32 0.01, %v401_v19 }
 0x1da   : > { %v415_v21 = vsel %vm411_vm2, %v611_v17, %v413_v18 }
 0x1db   : > { %v418_v22 = vsel %vm416_vm3, %v415_v21, -inf  ;;  %v414_v23 = vsel %vm410_vm4, %v401_v19, %v412_v20 }
 0x1dc   : > { %v417_v24 = vsel %vm416_vm3, %v414_v23, -inf }
 0x1dd   : > { %v419_v25 = vmax.f32 %v417_v24, %v418_v22 }
 0x1df   : > { %v420_v26 = vrot.slane %v419_v25, 4 }
 0x1e1   : > { %v421_v27 = vmax.f32 %v419_v25, %v420_v26 }
 0x1e3   : > { %v422_v28 = vrot.slane %v421_v27, 2 }
 0x1e5   : > { %v423_v29 = vmax.f32 %v421_v27, %v422_v28 }
 0x1e7   : > { %v424_v30 = vrot.slane %v423_v29, 1 }
 0x1e9   : > { %v425_v31 = vmax.f32 %v423_v29, %v424_v30 }
 0x1eb   : > { %v426_v32 = vsub.f32 %v414_v23, %v425_v31  ;;  %v427_v33 = vsub.f32 %v415_v21, %v425_v31 }
 0x1ed   : > { %v428_v34 = vmul.f32 1.442695, %v426_v32  ;;  %v430_v35 = vmul.f32 1.442695, %v427_v33 }
 0x1ef   : > { %677 = vpow2.f32 %v428_v34 }
 0x1f0   : > { %679 = vpow2.f32 %v430_v35 }
 0x1f9   : > { %v678_v38 = vpop.eup %677 }
 0x1fa   : > { %v680_v39 = vpop.eup %679  ;;  %v432_v40 = vsel %vm416_vm3, %v678_v38, 0.0  ;;  %v453_v41 = vmul.f32 %v678_v38, %v446_v36 }
 0x1fb   : > { %v433_v42 = vsel %vm416_vm3, %v680_v39, 0.0  ;;  %v454_v43 = vmul.f32 %v680_v39, %v451_v37 }
 0x1fc   : > { %v434_v44 = vadd.f32 %v433_v42, %v432_v40  ;;  %v455_v45 = vsel %vm416_vm3, %v453_v41, 0.0 }
 0x1fd   : > { %v456_v46 = vsel %vm416_vm3, %v454_v43, 0.0 }
 0x1fe   : > { %v435_v47 = vrot.slane %v434_v44, 4  ;;  %v457_v48 = vadd.f32 %v456_v46, %v455_v45 }
 0x200   : > { %v436_v49 = vadd.f32 %v435_v47, %v434_v44  ;;  %v458_v50 = vrot.slane %v457_v48, 4 }
 0x202   : > { %v437_v51 = vrot.slane %v436_v49, 2  ;;  %v459_v52 = vadd.f32 %v458_v50, %v457_v48 }
 0x204   : > { %v438_v53 = vadd.f32 %v437_v51, %v436_v49  ;;  %v460_v55 = vrot.slane %v459_v52, 2 }
 0x206   : > { %v439_v54 = vrot.slane %v438_v53, 1  ;;  %v461_v57 = vadd.f32 %v460_v55, %v459_v52 }
 0x208   : > { %v440_v56 = vadd.f32 %v439_v54, %v438_v53  ;;  %v462_v58 = vrot.slane %v461_v57, 1 }
 0x20a   : > { %681 = vrcp.f32 %v440_v56  ;;  %v463_v59 = vadd.f32 %v462_v58, %v461_v57 }
 0x214   : > { %v682_v60 = vpop.eup %681 }
 0x215   : > { %v465_v61 = vmul.f32 %v682_v60, %v463_v59 }
 0x217   : > { %467 = vst.msk [vmem:[%s226_s5] sm:$0x1] %vm466_vm5, %v465_v61 }
 0x218   : > { %696 = shalt.err (!%p693_p5)
}
 0x219   : > { %s697_s14 = scalar_lea.hbm %s878_s9, 16  ;;  %s701_s24 = scalar_lea.hbm %s929_s4, 32 }
 0x21a   : > { %p698_p6 = scmp.ne.s32.totalorder %s878_s9, %s697_s14  ;;  %p702_p10 = scmp.lt.u32.totalorder %s878_s9, %s929_s4 }
 0x21b   : > { %p703_p11 = scmp.lt.u32.totalorder %s701_s24, %s697_s14  ;;  %p705_p13 = scmp.lt.u32.totalorder %s697_s14, %s878_s9 }
 0x21c   : > { %p699_p7 = pnand %p698_p6, %p830_p4 }
 0x21d   : > { %p704_p12 = por %p703_p11, %p702_p10 }
 0x21e   : > { %p700_p9 = pneg %p699_p7 }
 0x21f   : > { %p706_p0 = por %p705_p13, %p704_p12 }
 0x221   : > { %p707_p1 = pnand %p706_p0, %p700_p9 }
 0x223   : > { %710 = shalt.err (!%p707_p1)
}
 0x224   : > { %616 = dma.vmem_to_hbm [thread:$0]  (%p830_p4), %s880_s6, 16, %s878_s9, %s469_s10  }
 0x225 PF: > { %p622_p2 = scmp.ge.s32.totalorder %s761_s20, 2  ;;  %s494_s30 = sand.u32 1, %s741_s15  }
 0x226   : > { %s495_s5 = scalar_lea.sflag [#allocation3], %s494_s30 }
 0x227   : > { %p619_p3 = pnand %p622_p2, %p837_p8 }
 0x229   : > { %736 = dma.done.wait (!%p619_p3), %s495_s5, 16  }
 0x22a   : > { %738 = vsyncadd (!%p619_p3), %s495_s5, 4294967280  ;;  %s17_s20 = sadd.s32 1, %s761_s20   ;;  %s932_s15 = smov %s745_s16 }
 0x22b   : > { %p14_p5 = scmp.ge.s32.totalorder %s17_s20, 4   ;;  %s933_s16 = smov %s749_s17 }
 0x22c   : > { %s934_s17 = smov %s843_s28  ;;  %s935_s18 = smov %s757_s19 }
 0x22d   : > { %s936_s19 = smov %s938_s23  ;;  %16 = sbr.rel (!%p14_p5) target bundleno = 4 (0x4), region = 74 }
 0x234   :  { %499 = vsyncpa [#allocation3], 1 }
 0x235   :  { %501 = vsyncpa [#allocation3 + $0x1], 1 }

</bundles_post_ra>
